<compile_context>
chip_gen: v7x
topology: tpu7x:2x2x1
jax: 0.10.0
libtpu: 0.0.40
codegen_flags: <defaults>
</compile_context>

<pallas_src>
import math
from functools import partial

import jax
import jax.numpy as jnp
from jax.experimental import pallas as pl
from jax.experimental.pallas import tpu as pltpu

CLAMP = 10000.0
LN_EPS = 1e-5
_INV_SQRT2 = 0.7071067811865476
ROW_TILE = 2048  # rows per grid step at graph scale (review: 2048-4096)

TIME_NODE_TYPES = ("legislator_term", "bill_version", "committee", "bill")


# ----------------------------- Pallas kernel --------------------------------
def _projector_kernel(x_ref, w_ref, hb_ref, o_ref, *, inv_d, approximate_gelu):
    # x_ref : [tile_n, d]       raw input rows (f32); ragged final tile allowed
    # w_ref : [d, hidden]       diag(ln_gamma) @ W   (f32 or bf16)
    # hb_ref: [1, hidden]       ln_beta @ W
    # o_ref : [tile_n, hidden]  output tile (last dim == true hidden, no padding)
    x = x_ref[...].astype(jnp.float32)

    # sanitize(): nan -> 0; clip bounds finite values and maps +/-inf to +/-CLAMP.
    # (Also neutralizes undefined rows of a ragged final block; those rows are
    #  row-independent below and their stores land out of bounds -> discarded.)
    x = jnp.where(jnp.isnan(x), 0.0, x)
    x = jnp.clip(x, -CLAMP, CLAMP)

    # LayerNorm statistics -- two-pass centered variance (numerically safe even for
    # high-mean rows with |x| up to CLAMP).  inv_d is a trace-time constant.
    mean = jnp.sum(x, axis=-1, keepdims=True) * inv_d
    xc = x - mean
    var = jnp.sum(xc * xc, axis=-1, keepdims=True) * inv_d
    xn = xc * jax.lax.rsqrt(var + LN_EPS)

    # LN affine folded into weights: (xn*g + b) @ W == xn @ (g[:,None]*W) + (b @ W)
    w = w_ref[...]
    h = jnp.dot(xn.astype(w.dtype), w, preferred_element_type=jnp.float32)
    h = h + hb_ref[...].astype(jnp.float32)

    if approximate_gelu:
        o_ref[...] = jax.nn.gelu(h, approximate=True).astype(o_ref.dtype)
    else:
        # exact (erf) GELU, matching torch.nn.GELU() default
        o_ref[...] = (0.5 * h * (1.0 + jax.lax.erf(h * _INV_SQRT2))).astype(o_ref.dtype)


def _projector_call(x, w, hb, *, out_dtype, approximate_gelu):
    """Fused sanitize+LN+Linear+GELU for one node type.  No padding of d or hidden;
    rows are tiled with a ragged final block instead of being padded."""
    n, d = x.shape
    hidden = w.shape[-1]
    tile_n = n if n <= ROW_TILE else ROW_TILE  # either full extent or multiple of 8
    grid = (pl.cdiv(n, tile_n),)
    return pl.pallas_call(
        partial(_projector_kernel, inv_d=1.0 / d, approximate_gelu=approximate_gelu),
        out_shape=jax.ShapeDtypeStruct((n, hidden), out_dtype),
        grid=grid,
        in_specs=[
            pl.BlockSpec((tile_n, d), lambda i: (i, 0)),
            pl.BlockSpec((d, hidden), lambda i: (0, 0)),   # VMEM-resident weight
            pl.BlockSpec((1, hidden), lambda i: (0, 0)),
        ],
        out_specs=pl.BlockSpec((tile_n, hidden), lambda i: (i, 0)),
        compiler_params=pltpu.CompilerParams(dimension_semantics=("parallel",)),
    )(x, w, hb)


# ------------------------------- JAX glue -----------------------------------
def time_encode(t, t_dim=8):
    """TimeEncoder.forward: sin/cos of t * (1 / 8**linspace(0,4,t_dim//2))."""
    inv = 1.0 / jnp.power(8.0, jnp.linspace(0.0, 4.0, t_dim // 2)).astype(jnp.float32)
    t = jnp.asarray(t, jnp.float32)
    t = jnp.where(jnp.isfinite(t), t, 0.0)  # nan/±inf -> 0, as in the torch module
    freqs = t[..., None] * inv
    return jnp.concatenate([jnp.sin(freqs), jnp.cos(freqs)], axis=-1)


def init_feature_projector(key, metadata, hidden, in_dims, t_dim=8,
                           param_dtype=jnp.float32):
    """Matches the torch module's init: LN weight=1/bias=0, Linear kaiming_uniform
    (a=0.01), no bias.  LN affine is folded into the weights ONCE here."""
    node_types = tuple(metadata[0])
    total_in, raw, packed = {}, {}, {}
    for i, nt in enumerate(node_types):
        use_time = nt in TIME_NODE_TYPES
        d = in_dims[nt] + (t_dim if use_time else 0)
        total_in[nt] = d
        gain = math.sqrt(2.0 / (1.0 + 0.01 ** 2))
        bound = gain * math.sqrt(3.0 / d)
        k = jax.random.fold_in(key, i)
        w = jax.random.uniform(k, (d, hidden), jnp.float32, minval=-bound, maxval=bound)
        ln_w = jnp.ones((d,), jnp.float32)
        ln_b = jnp.zeros((d,), jnp.float32)
        raw[nt] = {"ln_weight": ln_w, "ln_bias": ln_b, "w": w}
        packed[nt] = {
            "w": (ln_w[:, None] * w).astype(param_dtype),                 # diag(gamma)@W
            "hb": (ln_b @ w).reshape(1, hidden).astype(param_dtype),      # beta@W
        }
    return {
        "node_types": node_types,
        "total_in": total_in,
        "hidden": hidden,
        "t_dim": t_dim,
        "packed": packed,
        "raw": raw,  # kept for the pure-JAX reference check
    }


def feature_projector_forward(params, x_dict, timestamp_dict=None, *,
                              out_dtype=jnp.float32, approximate_gelu=False):
    t_dim = params["t_dim"]
    hidden = params["hidden"]
    out = {}
    for nt in params["node_types"]:
        if nt not in x_dict:
            continue
        x = jnp.asarray(x_dict[nt], jnp.float32)
        if timestamp_dict is not None and timestamp_dict.get(nt) is not None:
            # TODO(synk): fuse the sin/cos time features into the kernel to kill this
            # concat pass (needs per-type column offsets / in-kernel iota masking).
            x = jnp.concatenate([x, time_encode(timestamp_dict[nt], t_dim)], axis=-1)
        if x.shape[-1] != params["total_in"][nt]:
            raise ValueError(f"unexpected feature dim for node type {nt!r}")
        if x.shape[0] == 0:
            out[nt] = jnp.zeros((0, hidden), out_dtype)
            continue
        p = params["packed"][nt]
        out[nt] = _projector_call(x, p["w"], p["hb"],
                                  out_dtype=out_dtype,
                                  approximate_gelu=approximate_gelu)
    return out


# ------------------------- pure-JAX reference (test) -------------------------
def _reference_forward(params, x_dict, timestamp_dict=None):
    out = {}
    for nt in params["node_types"]:
        if nt not in x_dict:
            continue
        x = jnp.asarray(x_dict[nt], jnp.float32)
        x = jnp.where(jnp.isnan(x), 0.0, x)
        x = jnp.clip(x, -CLAMP, CLAMP)
        if timestamp_dict is not None and timestamp_dict.get(nt) is not None:
            x = jnp.concatenate([x, time_encode(timestamp_dict[nt], params["t_dim"])], -1)
        p = params["raw"][nt]
        mean = jnp.mean(x, axis=-1, keepdims=True)
        var = jnp.mean((x - mean) ** 2, axis=-1, keepdims=True)
        xn = (x - mean) / jnp.sqrt(var + LN_EPS) * p["ln_weight"] + p["ln_bias"]
        h = xn @ p["w"]
        out[nt] = 0.5 * h * (1.0 + jax.lax.erf(h * _INV_SQRT2))
    return out


# --------------------------------- main --------------------------------------
if __name__ == "__main__":
    key = jax.random.PRNGKey(0)

    metadata = (["legislator", "bill", "committee"], [])
    in_dims = {"legislator": 12, "bill": 10, "committee": 6}
    hidden = 32
    t_dim = 8

    params = init_feature_projector(
        jax.random.fold_in(key, 100), metadata, hidden, in_dims, t_dim
    )

    kx = jax.random.fold_in(key, 1)
    x_dict = {
        "legislator": jax.random.normal(jax.random.fold_in(kx, 0), (16, 12), jnp.float32),
        "bill": jax.random.normal(jax.random.fold_in(kx, 1), (16, 10), jnp.float32),
        "committee": jax.random.normal(jax.random.fold_in(kx, 2), (8, 6), jnp.float32),
    }
    # exercise sanitize(): inject NaN / inf deterministically
    x_dict["legislator"] = x_dict["legislator"].at[0, 0].set(jnp.nan)
    x_dict["bill"] = x_dict["bill"].at[1, 1].set(jnp.inf)

    timestamp_dict = {
        "bill": jnp.arange(16, dtype=jnp.float32) * 3.5,
        "committee": jnp.arange(8, dtype=jnp.float32) * 7.0,
        "legislator": None,  # no time features for this type
    }

    # ----- default config: f32 weights / f32 output / exact-erf GELU (torch parity)
    out = feature_projector_forward(params, x_dict, timestamp_dict)
    out = jax.tree_util.tree_map(jax.block_until_ready, out)

    assert out["legislator"].shape == (16, hidden)
    assert out["bill"].shape == (16, hidden)
    assert out["committee"].shape == (8, hidden)
    assert all(bool(jnp.all(jnp.isfinite(v))) for v in out.values())

    ref = _reference_forward(params, x_dict, timestamp_dict)
    for nt in out:
        assert bool(jnp.allclose(out[nt], ref[nt], atol=1e-3, rtol=1e-3)), nt

    # ----- bandwidth-lean config from the review (bf16 weights+output, tanh GELU);
    # verified loosely against the f32 reference (bf16 ~0.4% rel error expected).
    params_bf16 = init_feature_projector(
        jax.random.fold_in(key, 100), metadata, hidden, in_dims, t_dim,
        param_dtype=jnp.bfloat16,
    )
    out_fast = feature_projector_forward(
        params_bf16, x_dict, timestamp_dict,
        out_dtype=jnp.bfloat16, approximate_gelu=True,
    )
    out_fast = jax.tree_util.tree_map(jax.block_until_ready, out_fast)
    for nt in out_fast:
        assert out_fast[nt].shape == ref[nt].shape
        of = out_fast[nt].astype(jnp.float32)
        assert bool(jnp.all(jnp.isfinite(of)))
        assert bool(jnp.allclose(of, ref[nt], atol=1e-1, rtol=1e-1)), nt

    print("KERNEL_OK")
</pallas_src>

<mosaic_0001>
module attributes {stable_mosaic.version = 11 : i64} {
  func.func @_projector_kernel(%arg0: i32, %arg1: memref<16x12xf32, #tpu.memory_space<vmem>>, %arg2: memref<12x32xf32, #tpu.memory_space<vmem>>, %arg3: memref<1x32xf32, #tpu.memory_space<vmem>>, %arg4: memref<16x32xf32, #tpu.memory_space<vmem>>) attributes {dimension_semantics = [#tpu.dimension_semantics<parallel>], iteration_bounds = array<i64: 1>, scalar_prefetch = 0 : i64, scratch_operands = 0 : i64, tpu.core_type = #tpu.core_type<tc>, window_params = [{transform_indices = @transform_0, window_bounds = array<i64: 16, 12>}, {pipeline_mode = #tpu.pipeline_mode<synchronous>, transform_indices = @transform_1, window_bounds = array<i64: 12, 32>}, {pipeline_mode = #tpu.pipeline_mode<synchronous>, transform_indices = @transform_2, window_bounds = array<i64: 1, 32>}, {transform_indices = @transform_3, window_bounds = array<i64: 16, 32>}]} {
    %c0 = arith.constant 0 : index
    %c0_0 = arith.constant 0 : index
    %0 = vector.load %arg1[%c0, %c0_0] : memref<16x12xf32, #tpu.memory_space<vmem>>, vector<16x12xf32>
    %1 = arith.cmpf one, %0, %0 : vector<16x12xf32>
    %cst = arith.constant 0.000000e+00 : f32
    %2 = vector.broadcast %cst : f32 to vector<16x12xf32>
    %3 = arith.select %1, %2, %0 : vector<16x12xi1>, vector<16x12xf32>
    %cst_1 = arith.constant -1.000000e+04 : f32
    %cst_2 = arith.constant 1.000000e+04 : f32
    %4 = vector.broadcast %cst_1 : f32 to vector<16x12xf32>
    %5 = arith.maximumf %4, %3 : vector<16x12xf32>
    %6 = vector.broadcast %cst_2 : f32 to vector<16x12xf32>
    %7 = arith.minimumf %6, %5 : vector<16x12xf32>
    %cst_3 = arith.constant dense<0.000000e+00> : vector<16xf32>
    %8 = vector.multi_reduction <add>, %7, %cst_3 [1] : vector<16x12xf32> to vector<16xf32>
    %9 = vector.shape_cast %8 : vector<16xf32> to vector<16x1xf32>
    %cst_4 = arith.constant 0.0833333358 : f32
    %10 = vector.broadcast %cst_4 : f32 to vector<16x1xf32>
    %11 = arith.mulf %9, %10 : vector<16x1xf32>
    %12 = vector.broadcast %11 : vector<16x1xf32> to vector<16x12xf32>
    %13 = arith.subf %7, %12 : vector<16x12xf32>
    %14 = arith.mulf %13, %13 : vector<16x12xf32>
    %cst_5 = arith.constant dense<0.000000e+00> : vector<16xf32>
    %15 = vector.multi_reduction <add>, %14, %cst_5 [1] : vector<16x12xf32> to vector<16xf32>
    %16 = vector.shape_cast %15 : vector<16xf32> to vector<16x1xf32>
    %cst_6 = arith.constant 0.0833333358 : f32
    %17 = vector.broadcast %cst_6 : f32 to vector<16x1xf32>
    %18 = arith.mulf %16, %17 : vector<16x1xf32>
    %cst_7 = arith.constant 9.99999974E-6 : f32
    %19 = vector.broadcast %cst_7 : f32 to vector<16x1xf32>
    %20 = arith.addf %18, %19 : vector<16x1xf32>
    %21 = math.rsqrt %20 : vector<16x1xf32>
    %22 = vector.broadcast %21 : vector<16x1xf32> to vector<16x12xf32>
    %23 = arith.mulf %13, %22 : vector<16x12xf32>
    %c0_8 = arith.constant 0 : index
    %c0_9 = arith.constant 0 : index
    %24 = vector.load %arg2[%c0_8, %c0_9] : memref<12x32xf32, #tpu.memory_space<vmem>>, vector<12x32xf32>
    %cst_10 = arith.constant dense<0.000000e+00> : vector<16x32xf32>
    %25 = tpu.matmul %23, %24, %cst_10 {dimension_numbers = #tpu.dot_dimension_numbers<[1], [0], [0], [1], [0, 0, 1, 1], [], []>} : vector<16x12xf32>, vector<12x32xf32>, vector<16x32xf32> -> vector<16x32xf32>
    %c0_11 = arith.constant 0 : index
    %c0_12 = arith.constant 0 : index
    %26 = vector.load %arg3[%c0_11, %c0_12] : memref<1x32xf32, #tpu.memory_space<vmem>>, vector<1x32xf32>
    %27 = vector.broadcast %26 : vector<1x32xf32> to vector<16x32xf32>
    %28 = arith.addf %25, %27 : vector<16x32xf32>
    %cst_13 = arith.constant 5.000000e-01 : f32
    %29 = vector.broadcast %cst_13 : f32 to vector<16x32xf32>
    %30 = arith.mulf %29, %28 : vector<16x32xf32>
    %cst_14 = arith.constant 0.707106769 : f32
    %31 = vector.broadcast %cst_14 : f32 to vector<16x32xf32>
    %32 = arith.mulf %28, %31 : vector<16x32xf32>
    %33 = math.erf %32 : vector<16x32xf32>
    %cst_15 = arith.constant 1.000000e+00 : f32
    %34 = vector.broadcast %cst_15 : f32 to vector<16x32xf32>
    %35 = arith.addf %34, %33 : vector<16x32xf32>
    %36 = arith.mulf %30, %35 : vector<16x32xf32>
    %c0_16 = arith.constant 0 : index
    %c0_17 = arith.constant 0 : index
    %37 = vector.load %arg4[%c0_16, %c0_17] : memref<16x32xf32, #tpu.memory_space<vmem>>, vector<16x32xf32>
    tpu.vector_store %arg4[%c0_16, %c0_17], %36 {strides = array<i32>} : memref<16x32xf32, #tpu.memory_space<vmem>>, vector<16x32xf32>,
    return
  }
  func.func @transform_0(%arg0: i32) -> (i32, i32) {
    %c0_i32 = arith.constant 0 : i32
    %c0_i32_0 = arith.constant 0 : i32
    return %arg0, %c0_i32 : i32, i32
  }
  func.func @transform_1(%arg0: i32) -> (i32, i32) {
    %c0_i32 = arith.constant 0 : i32
    %c0_i32_0 = arith.constant 0 : i32
    %c0_i32_1 = arith.constant 0 : i32
    return %c0_i32, %c0_i32_0 : i32, i32
  }
  func.func @transform_2(%arg0: i32) -> (i32, i32) {
    %c0_i32 = arith.constant 0 : i32
    %c0_i32_0 = arith.constant 0 : i32
    %c0_i32_1 = arith.constant 0 : i32
    return %c0_i32, %c0_i32_0 : i32, i32
  }
  func.func @transform_3(%arg0: i32) -> (i32, i32) {
    %c0_i32 = arith.constant 0 : i32
    %c0_i32_0 = arith.constant 0 : i32
    return %arg0, %c0_i32 : i32, i32
  }
}

</mosaic_0001>

<bundles_post_ra>
// kernel: tpu_custom_call.1
= control target key start
LH: loop header
LB: loop body
LE: loop exit
PB: predicated region body
PF: predicated region fallthrough
CT: control target
= control target key end

     0   :  { %8 = vsyncpa [#allocation3], 0  ;;  %s394_s0 = inlined_call_operand.hbm [shape: f32[16,12], index: 0, kind: input, shape index: {}]   ;;  %s395_s1 = inlined_call_operand.hbm [shape: f32[12,32], index: 1, kind: input, shape index: {}]   ;;  %s396_s2 = inlined_call_operand.vmem [shape: f32[1,32], index: 2, kind: input, shape index: {}]   ;;  %s397_s3 = inlined_call_operand.hbm [shape: f32[16,32], index: 3, kind: output, shape index: {}]  }
   0x1   :  { %9 = vsyncpa [#allocation6], 0 }
   0x2   :  { %10 = vsyncpa [#allocation4], 0  ;;  %s314_s12 = smov [#allocation2]   ;;  %s242_s16 = scalar_lea.hbm %s394_s0, 256 }
   0x3   :  { %s16_s13 = sshll.u32 %s314_s12, 4  ;;  %p243_p0 = scmp.ne.s32.totalorder %s394_s0, %s242_s16  ;;  %s17_s13 = int_to_ptr.vmem [resolvable:$true] %s16_s13 }
   0x4   :  { %p246_p1 = scmp.lt.u32.totalorder %s242_s16, %s394_s0 }
   0x6   :  { %p248_p2 = pnand %p246_p1, %p243_p0 }
   0x8   :  { %251 = shalt.err (!%p248_p2)
}
   0x9   :  { %s252_s21 = scalar_lea.vmem %s17_s13, 256  ;;  %p257_p4 = scmp.lt.s32.totalorder %s17_s13, %s17_s13 }
   0xa   :  { %p253_p3 = scmp.ne.s32.totalorder %s17_s13, %s252_s21  ;;  %p258_p5 = scmp.lt.s32.totalorder %s252_s21, %s252_s21 }
   0xc   :  { %p259_p6 = por %p258_p5, %p257_p4 }
   0xe   :  { %p260_p7 = pnand %p259_p6, %p253_p3 }
  0x10   :  { %263 = shalt.err (!%p260_p7)
}
  0x11   :  { %s315_s22 = smov 128   ;;  %s316_s23 = smov 8  }
  0x12   :  { %22 = dma.hbm_to_vmem [thread:$0]  %s394_s0, 256, %s17_s13, [#allocation3], %s315_s22, %s315_s22, %s316_s23  }
  0x13   :  { %s317_s26 = smov [#allocation5]   ;;  %s264_s30 = scalar_lea.hbm %s395_s1, 256 }
  0x14   :  { %s28_s27 = sshll.u32 %s317_s26, 4  ;;  %p265_p8 = scmp.ne.s32.totalorder %s395_s1, %s264_s30  ;;  %s29_s27 = int_to_ptr.vmem [resolvable:$true] %s28_s27 }
  0x15   :  { %p268_p9 = scmp.lt.u32.totalorder %s264_s30, %s395_s1 }
  0x17   :  { %p270_p10 = pnand %p268_p9, %p265_p8 }
  0x19   :  { %273 = shalt.err (!%p270_p10)
}
  0x1a   :  { %s274_s8 = scalar_lea.vmem %s29_s27, 256  ;;  %p279_p12 = scmp.lt.s32.totalorder %s29_s27, %s29_s27 }
  0x1b   :  { %p275_p11 = scmp.ne.s32.totalorder %s29_s27, %s274_s8  ;;  %p280_p13 = scmp.lt.s32.totalorder %s274_s8, %s274_s8 }
  0x1d   :  { %p281_p0 = por %p280_p13, %p279_p12 }
  0x1f   :  { %p282_p1 = pnand %p281_p0, %p275_p11 }
  0x21   :  { %285 = shalt.err (!%p282_p1)
}
  0x22   :  { %34 = dma.hbm_to_vmem [thread:$0]  %s395_s1, 256, %s29_s27, [#allocation6], %s315_s22, %s315_s22, %s316_s23  }
  0x23   :  { %308 = dma.done.wait [#allocation3], 256  }
  0x24   :  { %309 = vsyncadd [#allocation3], 4294967040 }
  0x25   :  { %310 = dma.done.wait [#allocation6], 256  }
  0x26   :  { %311 = vsyncadd [#allocation6], 4294967040  ;;  %v43_v0 = vld [vmem:[#allocation2] sm:$0xff]  ;;  %v44_v1 = vld [vmem:[#allocation2 + $0x8] sm:$0xff]  ;;  %vm53_vm2 = vcmask 97280   ;;  %vm95_vm3 = vcmask 1043456  }
  0x27   :  { %vm45_vm0 = vcmp.ne.f32.partialorder %v43_v0, %v43_v0  ;;  %vm46_vm1 = vcmp.ne.f32.partialorder %v44_v1, %v44_v1  ;;  %v80_v18 = vld [vmem:[#allocation5] sm:$0xff]  ;;  %v81_v19 = vld [vmem:[#allocation5 + $0x8] sm:$0xf]  ;;  %vm318_vm4 = vmmov 1   ;;  %v207_v31 = vld [vmem:[%s396_s2] ss:$0 sm:$0xff] }
  0x28   :  { %v47_v2 = vsel %vm45_vm0, 0.0, %v43_v0  ;;  %v48_v3 = vsel %vm46_vm1, 0.0, %v44_v1  ;;  %v222_v20 = vpack.c.bf16 %v81_v19, %v80_v18  ;;  %vm223_vm5 = vmpackc.low %vm95_vm3, %vm318_vm4  ;;  %s319_s11 = smov [#allocation7]   ;;  %vm184_vm6 = vcmask 261120  }
  0x29   :  { %v205_v4 = vclamps-f32 %v47_v2, 10000.0  ;;  %v206_v5 = vclamps-f32 %v48_v3, 10000.0  ;;  %s192_s12 = sshll.u32 %s319_s11, 4  ;;  %s193_s12 = int_to_ptr.vmem [resolvable:$true] %s192_s12 }
  0x2a   :  { %224 = vmatprep.subr.msk.bf16.mxu0 %vm223_vm5, %v222_v20  ;;  %s286_s2 = scalar_lea.vmem %s193_s12, 256  ;;  %p291_p3 = scmp.lt.s32.totalorder %s193_s12, %s193_s12 }
  0x2b   :  { %v54_v6 = vsel %vm53_vm2, %v205_v4, 0.0  ;;  %v57_v7 = vsel %vm53_vm2, %v206_v5, 0.0  ;;  %227 = vmatpush3.bf16.msk.msra.mxu0 %vm223_vm5, %v222_v20  ;;  %p287_p2 = scmp.ne.s32.totalorder %s193_s12, %s286_s2  ;;  %p292_p4 = scmp.lt.s32.totalorder %s286_s2, %s286_s2 }
  0x2c   :  { %55 = vadd.xlane.f32.xlu0 %v54_v6 }
  0x2d   :  { %p293_p5 = por %p292_p4, %p291_p3 }
  0x2f   :  { %p294_p6 = pnand %p293_p5, %p287_p2 }
  0x30   :  { %58 = vadd.xlane.f32.xlu0 %v57_v7 }
  0xb9   :  { %v56_v8 = vpop.xlane.xlu0 %55 }
  0xba   :  { %v60_v9 = vmul.f32 0.083333336, %v56_v8 }
  0xbc   :  { %v62_v10 = vsub.f32 %v205_v4, %v60_v9 }
  0xbd   :  { %v59_v11 = vpop.xlane.xlu0 %58 }
  0xbe   :  { %v61_v12 = vmul.f32 0.083333336, %v59_v11  ;;  %v64_v13 = vmul.f32 %v62_v10, %v62_v10 }
  0xc0   :  { %v63_v14 = vsub.f32 %v206_v5, %v61_v12  ;;  %v66_v15 = vsel %vm53_vm2, %v64_v13, 0.0 }
  0xc1   :  { %67 = vadd.xlane.f32.xlu1 %v66_v15 }
  0xc2   :  { %v65_v16 = vmul.f32 %v63_v14, %v63_v14 }
  0xc4   :  { %v69_v17 = vsel %vm53_vm2, %v65_v16, 0.0 }
  0xc5   :  { %70 = vadd.xlane.f32.xlu1 %v69_v17 }
 0x14e   :  { %v68_v21 = vpop.xlane.xlu1 %67 }
 0x14f   :  { %v72_v22 = vmul.f32 0.083333336, %v68_v21 }
 0x151   :  { %v74_v23 = vadd.f32 1e-05, %v72_v22 }
 0x152   :  { %v71_v24 = vpop.xlane.xlu1 %70 }
 0x153   :  { %234 = vrsqrt.f32 %v74_v23  ;;  %v73_v25 = vmul.f32 0.083333336, %v71_v24 }
 0x155   :  { %v75_v26 = vadd.f32 1e-05, %v73_v25 }
 0x157   :  { %236 = vrsqrt.f32 %v75_v26 }
 0x15d   :  { %v235_v27 = vpop.eup %234 }
 0x15e   :  { %v78_v28 = vmul.f32 %v235_v27, %v62_v10 }
 0x160   :  { %219 = vmatprep.mubr.msk.f32.mxu0 %vm53_vm2, %v78_v28 }
 0x161   :  { %v237_v29 = vpop.eup %236 }
 0x162   :  { %v79_v30 = vmul.f32 %v237_v29, %v63_v14 }
 0x164   :  { %220 = vmatmul.mubr.msk.f32.vlgmr.msra.gmra.mrb[0].mxu0 %vm53_vm2, %v79_v30 }
 0x237   :  { %v221_v32 = vpop.f32.mrb[0].mxu0 }
 0x238   :  { %v171_v33 = vadd.f32 %v221_v32, %v207_v31  ;;  %v165_v34 = vpop.f32.mrb[1].mxu0 }
 0x239   :  { %v166_v35 = vadd.f32 %v207_v31, %v165_v34 }
 0x23a   :  { %v177_v36 = vmul.f32 0.70710677, %v171_v33  ;;  %v175_v40 = vmul.f32 0.5, %v171_v33 }
 0x23b   :  { %v176_v37 = vmul.f32 0.70710677, %v166_v35  ;;  %v174_v42 = vmul.f32 0.5, %v166_v35 }
 0x23c   :  { %238 = verf.f32 %v177_v36 }
 0x23d   :  { %240 = verf.f32 %v176_v37 }
 0x246   :  { %v239_v38 = vpop.eup %238 }
 0x247   :  { %v241_v39 = vpop.eup %240  ;;  %v181_v41 = vadd.f32 1.0, %v239_v38 }
 0x248   :  { %v180_v43 = vadd.f32 1.0, %v241_v39 }
 0x249   :  { %v183_v44 = vmul.f32 %v181_v41, %v175_v40 }
 0x24a   :  { %v182_v45 = vmul.f32 %v180_v43, %v174_v42 }
 0x24b   :  { %186 = vst.msk [vmem:[#allocation7 + $0x8] sm:$0xff] %vm184_vm6, %v183_v44 }
 0x24c   :  { %185 = vst.msk [vmem:[#allocation7] sm:$0xff] %vm184_vm6, %v182_v45 }
 0x24d   :  { %297 = shalt.err (!%p294_p6)
}
 0x24e   :  { %s298_s15 = scalar_lea.hbm %s397_s3, 256 }
 0x24f   :  { %p299_p7 = scmp.ne.s32.totalorder %s397_s3, %s298_s15  ;;  %p302_p8 = scmp.lt.u32.totalorder %s298_s15, %s397_s3 }
 0x251   :  { %p304_p9 = pnand %p302_p8, %p299_p7 }
 0x253   :  { %307 = shalt.err (!%p304_p9)
}
 0x254   :  { %198 = dma.vmem_to_hbm [thread:$0]  %s193_s12, 256, %s397_s3, [#allocation4], %s315_s22, %s315_s22, %s316_s23  }
 0x255   :  { %312 = dma.done.wait [#allocation4], 256  }
 0x256   :  { %313 = vsyncadd [#allocation4], 4294967040 }
 0x257   :  { %202 = vsyncpa [#allocation3], 1 }
 0x258   :  { %203 = vsyncpa [#allocation6], 1 }
 0x259   :  { %204 = vsyncpa [#allocation4], 1 }

</bundles_post_ra>
